<compile_context>
chip_gen: v7x
topology: tpu7x:2x2x1
jax: 0.10.0
libtpu: 0.0.40
codegen_flags: <defaults>
</compile_context>

<pallas_src>
import jax
import jax.numpy as jnp
from jax.experimental import pallas as pl
from jax.experimental.pallas import tpu as pltpu


def _goad_c1_kernel(x_ref, w1_ref, w2_ref, b2_ref, tc_ref, ce_ref):
    # x_ref : (1, d, TL)     one batch row, a lane-dense tile of positions
    # w1_ref: (ndf, d)       trunk weight (PyTorch Conv1d weight, k=1 squeezed)
    # w2_ref: (nc, ndf)      head weight
    # b2_ref: (nc, 1)        head bias (broadcast over L)
    # tc_ref: (1, ndf, TL)
    # ce_ref: (1, nc, TL)
    x = x_ref[0]                                   # (d, TL)

    # trunk: Conv1d(d -> ndf, k=1, bias=False)
    tc = jnp.dot(w1_ref[...], x, preferred_element_type=jnp.float32)   # (ndf, TL)
    tc_ref[0] = tc.astype(tc_ref.dtype)

    # head: LeakyReLU(0.2) then Conv1d(ndf -> nc, k=1, bias=True)
    # `tc` stays vreg-resident; no re-load from VMEM.
    h = jnp.where(tc > 0, tc, 0.2 * tc)
    ce = jnp.dot(w2_ref[...], h, preferred_element_type=jnp.float32) + b2_ref[...]
    ce_ref[0] = ce.astype(ce_ref.dtype)


def _pick_l_tile(L, max_tile=2048):
    """Pick a lane-dense tile along L that satisfies the (8,128) rule."""
    if L <= max_tile:
        return L                      # full extent always legal
    # Largest multiple of 128 <= max_tile that divides L.
    for t in range(max_tile, 127, -128):
        if L % t == 0:
            return t
    return L                          # fall back to a single (big) block


def goad_netc1_forward(x_ncl, w1, w2, b2):
    """x_ncl: (N, d, L) f32. w1: (ndf, d), w2: (nc, ndf), b2: (nc,).

    Returns (tc, ce) with shapes (N, ndf, L), (N, nc, L) — same as PyTorch.
    """
    N, d, L = x_ncl.shape
    ndf = w1.shape[0]
    nc = w2.shape[0]

    TL = _pick_l_tile(L)
    n_l_tiles = L // TL
    b2_col = b2.reshape(nc, 1)

    tc, ce = pl.pallas_call(
        _goad_c1_kernel,
        out_shape=(
            jax.ShapeDtypeStruct((N, ndf, L), jnp.float32),
            jax.ShapeDtypeStruct((N, nc, L), jnp.float32),
        ),
        grid=(N, n_l_tiles),
        in_specs=[
            pl.BlockSpec((1, d, TL), lambda n, l: (n, 0, l)),   # streamed x
            pl.BlockSpec((ndf, d), lambda n, l: (0, 0)),        # resident W1
            pl.BlockSpec((nc, ndf), lambda n, l: (0, 0)),       # resident W2
            pl.BlockSpec((nc, 1), lambda n, l: (0, 0)),         # resident b2
        ],
        out_specs=(
            pl.BlockSpec((1, ndf, TL), lambda n, l: (n, 0, l)),
            pl.BlockSpec((1, nc, TL), lambda n, l: (n, 0, l)),
        ),
        compiler_params=pltpu.CompilerParams(
            dimension_semantics=("parallel", "parallel"),
            vmem_limit_bytes=64 << 20,
        ),
    )(x_ncl, w1, w2, b2_col)

    return tc, ce


def _reference_forward(x_ncl, w1, w2, b2):
    # Pure-JAX reference matching PyTorch Conv1d(k=1) semantics.
    tc = jnp.einsum("od,ndl->nol", w1, x_ncl)
    h = jnp.where(tc > 0, tc, 0.2 * tc)
    ce = jnp.einsum("co,nol->ncl", w2, h) + b2[None, :, None]
    return tc, ce


if __name__ == "__main__":
    # Small shapes consistent with the module: d in-channels, ndf trunk width,
    # nc output classes, batch N, sequence length L.
    N, d, L = 2, 8, 16
    ndf, nc = 32, 4

    key = jax.random.PRNGKey(0)
    kx, k1, k2, kb = jax.random.split(key, 4)

    x = jax.random.normal(kx, (N, d, L), dtype=jnp.float32)
    w1 = 0.1 * jax.random.normal(k1, (ndf, d), dtype=jnp.float32)   # trunk: Conv1d(d, ndf)
    w2 = 0.1 * jax.random.normal(k2, (nc, ndf), dtype=jnp.float32)  # head : Conv1d(ndf, nc)
    b2 = 0.1 * jax.random.normal(kb, (nc,), dtype=jnp.float32)

    tc, ce = goad_netc1_forward(x, w1, w2, b2)
    jax.block_until_ready((tc, ce))

    tc_ref, ce_ref = _reference_forward(x, w1, w2, b2)
    assert tc.shape == (N, ndf, L) and ce.shape == (N, nc, L)
    assert jnp.allclose(tc, tc_ref, atol=1e-5, rtol=1e-5)
    assert jnp.allclose(ce, ce_ref, atol=1e-5, rtol=1e-5)

    print("KERNEL_OK")
</pallas_src>

<mosaic_0001>
module attributes {stable_mosaic.version = 11 : i64} {
  func.func @_goad_c1_kernel(%arg0: i32, %arg1: i32, %arg2: memref<1x8x16xf32, #tpu.memory_space<vmem>>, %arg3: memref<32x8xf32, #tpu.memory_space<vmem>>, %arg4: memref<4x32xf32, #tpu.memory_space<vmem>>, %arg5: memref<4x1xf32, #tpu.memory_space<vmem>>, %arg6: memref<1x32x16xf32, #tpu.memory_space<vmem>>, %arg7: memref<1x4x16xf32, #tpu.memory_space<vmem>>) attributes {dimension_semantics = [#tpu.dimension_semantics<parallel>, #tpu.dimension_semantics<parallel>], iteration_bounds = array<i64: 2, 1>, scalar_prefetch = 0 : i64, scratch_operands = 0 : i64, tpu.core_type = #tpu.core_type<tc>, window_params = [{transform_indices = @transform_0, window_bounds = array<i64: 1, 8, 16>}, {pipeline_mode = #tpu.pipeline_mode<synchronous>, transform_indices = @transform_1, window_bounds = array<i64: 32, 8>}, {pipeline_mode = #tpu.pipeline_mode<synchronous>, transform_indices = @transform_2, window_bounds = array<i64: 4, 32>}, {pipeline_mode = #tpu.pipeline_mode<synchronous>, transform_indices = @transform_3, window_bounds = array<i64: 4, 1>}, {transform_indices = @transform_4, window_bounds = array<i64: 1, 32, 16>}, {transform_indices = @transform_5, window_bounds = array<i64: 1, 4, 16>}]} {
    %c0 = arith.constant 0 : index
    %c0_0 = arith.constant 0 : index
    %c0_1 = arith.constant 0 : index
    %0 = vector.load %arg2[%c0, %c0_0, %c0_1] : memref<1x8x16xf32, #tpu.memory_space<vmem>>, vector<1x8x16xf32>
    %1 = vector.shape_cast %0 : vector<1x8x16xf32> to vector<8x16xf32>
    %c0_2 = arith.constant 0 : index
    %c0_3 = arith.constant 0 : index
    %2 = vector.load %arg3[%c0_2, %c0_3] : memref<32x8xf32, #tpu.memory_space<vmem>>, vector<32x8xf32>
    %cst = arith.constant dense<0.000000e+00> : vector<32x16xf32>
    %3 = tpu.matmul %2, %1, %cst {dimension_numbers = #tpu.dot_dimension_numbers<[1], [0], [0], [1], [0, 0, 1, 1], [], []>} : vector<32x8xf32>, vector<8x16xf32>, vector<32x16xf32> -> vector<32x16xf32>
    %c0_4 = arith.constant 0 : index
    %c0_5 = arith.constant 0 : index
    %c0_6 = arith.constant 0 : index
    %4 = vector.load %arg6[%c0_4, %c0_5, %c0_6] : memref<1x32x16xf32, #tpu.memory_space<vmem>>, vector<1x32x16xf32>
    %5 = vector.shape_cast %4 : vector<1x32x16xf32> to vector<32x16xf32>
    %6 = vector.shape_cast %3 : vector<32x16xf32> to vector<1x32x16xf32>
    tpu.vector_store %arg6[%c0_4, %c0_5, %c0_6], %6 {strides = array<i32>} : memref<1x32x16xf32, #tpu.memory_space<vmem>>, vector<1x32x16xf32>,
    %cst_7 = arith.constant 0.000000e+00 : f32
    %7 = vector.broadcast %cst_7 : f32 to vector<32x16xf32>
    %8 = arith.cmpf ogt, %3, %7 : vector<32x16xf32>
    %cst_8 = arith.constant 2.000000e-01 : f32
    %9 = vector.broadcast %cst_8 : f32 to vector<32x16xf32>
    %10 = arith.mulf %9, %3 : vector<32x16xf32>
    %11 = arith.select %8, %3, %10 : vector<32x16xi1>, vector<32x16xf32>
    %c0_9 = arith.constant 0 : index
    %c0_10 = arith.constant 0 : index
    %12 = vector.load %arg4[%c0_9, %c0_10] : memref<4x32xf32, #tpu.memory_space<vmem>>, vector<4x32xf32>
    %cst_11 = arith.constant dense<0.000000e+00> : vector<4x16xf32>
    %13 = tpu.matmul %12, %11, %cst_11 {dimension_numbers = #tpu.dot_dimension_numbers<[1], [0], [0], [1], [0, 0, 1, 1], [], []>} : vector<4x32xf32>, vector<32x16xf32>, vector<4x16xf32> -> vector<4x16xf32>
    %c0_12 = arith.constant 0 : index
    %c0_13 = arith.constant 0 : index
    %14 = vector.load %arg5[%c0_12, %c0_13] : memref<4x1xf32, #tpu.memory_space<vmem>>, vector<4x1xf32>
    %15 = vector.broadcast %14 : vector<4x1xf32> to vector<4x16xf32>
    %16 = arith.addf %13, %15 : vector<4x16xf32>
    %c0_14 = arith.constant 0 : index
    %c0_15 = arith.constant 0 : index
    %c0_16 = arith.constant 0 : index
    %17 = vector.load %arg7[%c0_14, %c0_15, %c0_16] : memref<1x4x16xf32, #tpu.memory_space<vmem>>, vector<1x4x16xf32>
    %18 = vector.shape_cast %17 : vector<1x4x16xf32> to vector<4x16xf32>
    %19 = vector.shape_cast %16 : vector<4x16xf32> to vector<1x4x16xf32>
    tpu.vector_store %arg7[%c0_14, %c0_15, %c0_16], %19 {strides = array<i32>} : memref<1x4x16xf32, #tpu.memory_space<vmem>>, vector<1x4x16xf32>,
    return
  }
  func.func @transform_0(%arg0: i32, %arg1: i32) -> (i32, i32, i32) {
    %c0_i32 = arith.constant 0 : i32
    %c0_i32_0 = arith.constant 0 : i32
    return %arg0, %c0_i32, %arg1 : i32, i32, i32
  }
  func.func @transform_1(%arg0: i32, %arg1: i32) -> (i32, i32) {
    %c0_i32 = arith.constant 0 : i32
    %c0_i32_0 = arith.constant 0 : i32
    %c0_i32_1 = arith.constant 0 : i32
    return %c0_i32, %c0_i32_0 : i32, i32
  }
  func.func @transform_2(%arg0: i32, %arg1: i32) -> (i32, i32) {
    %c0_i32 = arith.constant 0 : i32
    %c0_i32_0 = arith.constant 0 : i32
    %c0_i32_1 = arith.constant 0 : i32
    return %c0_i32, %c0_i32_0 : i32, i32
  }
  func.func @transform_3(%arg0: i32, %arg1: i32) -> (i32, i32) {
    %c0_i32 = arith.constant 0 : i32
    %c0_i32_0 = arith.constant 0 : i32
    %c0_i32_1 = arith.constant 0 : i32
    return %c0_i32, %c0_i32_0 : i32, i32
  }
  func.func @transform_4(%arg0: i32, %arg1: i32) -> (i32, i32, i32) {
    %c0_i32 = arith.constant 0 : i32
    %c0_i32_0 = arith.constant 0 : i32
    return %arg0, %c0_i32, %arg1 : i32, i32, i32
  }
  func.func @transform_5(%arg0: i32, %arg1: i32) -> (i32, i32, i32) {
    %c0_i32 = arith.constant 0 : i32
    %c0_i32_0 = arith.constant 0 : i32
    return %arg0, %c0_i32, %arg1 : i32, i32, i32
  }
}

</mosaic_0001>

<bundles_post_ra>
// kernel: tpu_custom_call.1
= control target key start
LH: loop header
LB: loop body
LE: loop exit
PB: predicated region body
PF: predicated region fallthrough
CT: control target
= control target key end

     0   :  { %11 = vsyncpa [#allocation3], 0  ;;  %s1466_s0 = inlined_call_operand.hbm [shape: f32[2,8,16], index: 0, kind: input, shape index: {}]   ;;  %s1467_s1 = inlined_call_operand.hbm [shape: f32[32,8], index: 1, kind: input, shape index: {}]   ;;  %s1468_s2 = inlined_call_operand.hbm [shape: f32[4,32], index: 2, kind: input, shape index: {}]   ;;  %s1469_s3 = inlined_call_operand.hbm [shape: f32[4,1], index: 3, kind: input, shape index: {}]   ;;  %s1470_s4 = inlined_call_operand.hbm [shape: f32[2,32,16], index: 4, kind: output, shape index: {0}]   ;;  %s1471_s5 = inlined_call_operand.hbm [shape: f32[2,4,16], index: 5, kind: output, shape index: {1}]  }
   0x1   :  { %13 = vsyncpa [#allocation3 + $0x1], 0 }
   0x2   :  { %14 = vsyncpa [#allocation6], 0 }
   0x3   :  { %15 = vsyncpa [#allocation9], 0 }
   0x4   :  { %16 = vsyncpa [#allocation4], 0 }
   0x5   :  { %18 = vsyncpa [#allocation4 + $0x1], 0 }
   0x6   :  { %19 = vsyncpa [#allocation12], 0 }
   0x7   :  { %21 = vsyncpa [#allocation12 + $0x1], 0  ;;  %s1146_s18 = smov 0   ;;  %s1148_s19 = smov 0  }
   0x8   :  { %s1150_s20 = smov 0   ;;  %s1152_s21 = smov 0  }
   0x9   :  { %s1154_s22 = smov 0   ;;  %s1156_s23 = smov 0  }
   0xa LB: > { %1478 = sst [smem:[#allocation18_spill]] %s1080_s18  ;;  %s693_s24 = sadd.s32 4294967295, %s1100_s23   ;;  %s1100_s23 = sphi %s1156_s23, %s27_s23   ;;  %s1096_s22 = sphi %s1154_s22, %s1501_s22   ;;  %s1092_s21 = sphi %s1152_s21, %s1500_s21   ;;  %s1088_s20 = sphi %s1150_s20, %s1499_s20   ;;  %s1084_s19 = sphi %s1148_s19, %s1498_s19   ;;  %s1080_s18 = sphi %s1146_s18, %s1497_s18  }
   0xb   : > { %s694_s25 = sadd.s32 4294967294, %s1100_s23   ;;  %p61_p0 = scmp.ne.s32.totalorder %s1084_s19, %s1080_s18 }
   0xc   : > { %p1180_p1 = scmp.eq.s32.totalorder %s693_s24, 0  ;;  %p1184_p2 = scmp.eq.s32.totalorder %s693_s24, 1 }
   0xd   : > { %p156_p3 = scmp.eq.s32.totalorder %s694_s25, 1  ;;  %p695_p5 = scmp.ge.s32.totalorder %s1100_s23, 1 }
   0xe   : > { %s1479_s26 = scalar_select %p1180_p1, 1, 0 }
   0xf   : > { %s1480_s27 = scalar_select %p1184_p2, 1, 0 }
  0x10   : > { %p1190_p4 = por %p1180_p1, %p61_p0  ;;  %p1195_p6 = por %p156_p3, %p61_p0 }
  0x11   : > { %p191_p7 = scmp.lt.s32.totalorder %s1100_s23, 3  ;;  %s1102_s6 = smov [#allocation5]  }
  0x12   : > { %s1481_s28 = scalar_select %p1190_p4, 1, 0 }
  0x13   : > { %s1482_s29 = scalar_select %p1195_p6, 1, 0 }
  0x14   : > { %p1200_p8 = pnand %p695_p5, %p191_p7  ;;  %s203_s7 = sshll.u32 %s1102_s6, 4  ;;  %s1204_s7 = int_to_ptr.vmem [resolvable:$true] %s203_s7 }
  0x15   : > { %1483 = sst [smem:[#allocation19_spill]] %s1482_s29  ;;  %s1103_s9 = smov [#allocation7]  }
  0x16   : > { %s1484_s30 = scalar_select %p1200_p8, 1, 0 }
  0x17   : > { %p775_p9 = pneg %p1200_p8  ;;  %s217_s10 = sshll.u32 %s1103_s9, 4  ;;  %s1215_s10 = int_to_ptr.vmem [resolvable:$true] %s217_s10 }
  0x18   : > { %s1104_s11 = smov [#allocation8]   ;;  %s864_s15 = scalar_lea.hbm %s1467_s1, 512 }
  0x19   : > { %p1211_p11 = pnand %p775_p9, %p1180_p1  ;;  %s1217_s12 = sshll.u32 %s1104_s11, 4  ;;  %s229_s12 = int_to_ptr.vmem [resolvable:$true] %s1217_s12 }
  0x1a   : > { %p865_p12 = scmp.ne.s32.totalorder %s1467_s1, %s864_s15  ;;  %p871_p5 = scmp.lt.u32.totalorder %s864_s15, %s1467_s1 }
  0x1b   : > { %p1227_p13 = pneg %p1211_p11 }
  0x1d   : > { %p867_p0 = pnand %p1227_p13, %p865_p12 }
  0x1f   : > { %p868_p3 = pneg %p867_p0 }
  0x21   : > { %p873_p7 = pnand %p871_p5, %p868_p3 }
  0x23   : > { %876 = shalt.err (!%p873_p7)
}
  0x24   : > { %s877_s9 = scalar_lea.vmem %s1204_s7, 512  ;;  %p885_p1 = scmp.lt.s32.totalorder %s1204_s7, %s1204_s7 }
  0x25   : > { %p878_p9 = scmp.ne.s32.totalorder %s1204_s7, %s877_s9  ;;  %p886_p4 = scmp.lt.s32.totalorder %s877_s9, %s877_s9 }
  0x27   : > { %p880_p10 = pnand %p878_p9, %p1227_p13  ;;  %p887_p12 = por %p886_p4, %p885_p1 }
  0x29   : > { %p881_p6 = pneg %p880_p10 }
  0x2b   : > { %p888_p0 = pnand %p887_p12, %p881_p6 }
  0x2d   : > { %891 = shalt.err (!%p888_p0)
}
  0x2e   : > { %s1105_s11 = smov 128   ;;  %s1106_s13 = smov 8  }
  0x2f   : > { %778 = dma.hbm_to_vmem [thread:$0]  (!%p1211_p11), %s1467_s1, 512, %s1204_s7, [#allocation6], %s1105_s11, %s1105_s11, %s1106_s13  }
  0x30   : > { %s892_s25 = scalar_lea.hbm %s1468_s2, 64 }
  0x31   : > { %p893_p1 = scmp.ne.s32.totalorder %s1468_s2, %s892_s25  ;;  %p899_p10 = scmp.lt.u32.totalorder %s892_s25, %s1468_s2 }
  0x33   : > { %p895_p4 = pnand %p893_p1, %p1227_p13 }
  0x35   : > { %p896_p6 = pneg %p895_p4 }
  0x37   : > { %p901_p3 = pnand %p899_p10, %p896_p6 }
  0x39   : > { %904 = shalt.err (!%p901_p3)
}
  0x3a   : > { %s905_s7 = scalar_lea.vmem %s1215_s10, 64  ;;  %p913_p12 = scmp.lt.s32.totalorder %s1215_s10, %s1215_s10 }
  0x3b   : > { %p906_p5 = scmp.ne.s32.totalorder %s1215_s10, %s905_s7  ;;  %p914_p0 = scmp.lt.s32.totalorder %s905_s7, %s905_s7 }
  0x3d   : > { %p908_p7 = pnand %p906_p5, %p1227_p13  ;;  %p915_p1 = por %p914_p0, %p913_p12 }
  0x3f   : > { %p909_p9 = pneg %p908_p7 }
  0x41   : > { %p916_p4 = pnand %p915_p1, %p909_p9 }
  0x43   : > { %919 = shalt.err (!%p916_p4)
}
  0x44   : > { %781 = dma.hbm_to_vmem [thread:$0]  (!%p1211_p11), %s1468_s2, 64, %s1215_s10, [#allocation6]  }
  0x45   : > { %s920_s14 = scalar_lea.hbm %s1469_s3, 64 }
  0x46   : > { %p921_p6 = scmp.ne.s32.totalorder %s1469_s3, %s920_s14  ;;  %p927_p5 = scmp.lt.u32.totalorder %s920_s14, %s1469_s3 }
  0x48   : > { %p923_p10 = pnand %p921_p6, %p1227_p13 }
  0x4a   : > { %p924_p3 = pneg %p923_p10 }
  0x4c   : > { %p929_p7 = pnand %p927_p5, %p924_p3 }
  0x4e   : > { %932 = shalt.err (!%p929_p7)
}
  0x4f   : > { %s933_s6 = scalar_lea.vmem %s229_s12, 64  ;;  %p941_p1 = scmp.lt.s32.totalorder %s229_s12, %s229_s12 }
  0x50   : > { %p934_p9 = scmp.ne.s32.totalorder %s229_s12, %s933_s6  ;;  %p942_p4 = scmp.lt.s32.totalorder %s933_s6, %s933_s6 }
  0x52   : > { %p936_p12 = pnand %p934_p9, %p1227_p13  ;;  %p943_p8 = por %p942_p4, %p941_p1 }
  0x54   : > { %p937_p0 = pneg %p936_p12 }
  0x56   : > { %p944_p2 = pnand %p943_p8, %p937_p0 }
  0x58   : > { %947 = shalt.err (!%p944_p2)
}
  0x59   : > { %784 = dma.hbm_to_vmem [thread:$0]  (!%p1211_p11), %s1469_s3, 64, %s229_s12, [#allocation9]  }
  0x5a   : > { %s48_s24 = sadd.s32 1, %s1088_s20  ;;  %s39_s7 = sadd.s32 1, %s1096_s22 }
  0x5b   : > { %p55_p2 = scmp.ne.s32.totalorder %s1088_s20, %s1084_s19  ;;  %p41_p8 = scmp.ge.s32.totalorder %s39_s7, 2 }
  0x5c   : > { %p56_p13 = scmp.eq.s32.totalorder %s1100_s23, 0  ;;  %p1487_p6 = scmp.ne.s32.totalorder %s1480_s27, 0 }
  0x5d   : > { %p799_p3 = scmp.lt.s32.totalorder %s1100_s23, 2  ;;  %s1503_s7 = smov (%p41_p8, %s39_s7), 0 }
  0x5e   : > { %p1297_p10 = por %p1487_p6, %p55_p2  ;;  %p57_p5 = por %p56_p13, %p55_p2 }
  0x5f   : > { %s239_s18 = sand.u32 1, %s1088_s20   ;;  %s43_s29 = ssub.s32 %s1096_s22, %s1503_s7 }
  0x60   : > { %p46_p7 = scmp.eq.s32.totalorder %s43_s29, 0  ;;  %s700_s12 = sshll.u32 %s239_s18, 3 }
  0x61   : > { %s701_s11 = sshll.u32 %s1096_s22, 7  ;;  %s243_s16 = scalar_lea.vmem [#allocation2], %s700_s12 }
  0x62   : > { %s1309_s13 = scalar_select %p46_p7, %s1088_s20, %s48_s24  }
  0x63   : > { %s1314_s27 = scalar_lea.hbm %s1466_s0, %s701_s11  ;;  %s251_s17 = sshll.u32 %s243_s16, 4  ;;  %s1316_s17 = int_to_ptr.vmem [resolvable:$true] %s251_s17 }
  0x64   : > { %p1320_p11 = pnand %p799_p3, %p57_p5  ;;  %s240_s6 = scalar_lea.sflag [#allocation3], %s239_s18 }
  0x65   : > { %s948_s10 = scalar_lea.hbm %s1314_s27, 128  ;;  %s953_s29 = scalar_lea.hbm %s1466_s0, 256 }
  0x66   : > { %p949_p9 = scmp.ne.s32.totalorder %s1314_s27, %s948_s10  ;;  %p950_p12 = pneg %p1320_p11 }
  0x67   : > { %p954_p4 = scmp.lt.u32.totalorder %s1314_s27, %s1466_s0  ;;  %p955_p2 = scmp.lt.u32.totalorder %s953_s29, %s948_s10 }
  0x68   : > { %p951_p0 = pnand %p950_p12, %p949_p9  ;;  %p957_p13 = scmp.lt.u32.totalorder %s948_s10, %s1314_s27 }
  0x69   : > { %p956_p8 = por %p955_p2, %p954_p4 }
  0x6a   : > { %p952_p1 = pneg %p951_p0 }
  0x6b   : > { %p958_p6 = por %p957_p13, %p956_p8 }
  0x6d   : > { %p959_p3 = pnand %p958_p6, %p952_p1 }
  0x6f   : > { %962 = shalt.err (!%p959_p3)
}
  0x70   : > { %s963_s18 = scalar_lea.vmem %s1316_s17, 128  ;;  %s1107_s14 = smov [#allocation2]  }
  0x71   : > { %p964_p5 = scmp.ne.s32.totalorder %s1316_s17, %s963_s18  ;;  %s968_s15 = sshll.u32 %s1107_s14, 4  ;;  %s969_s15 = int_to_ptr.vmem [resolvable:$false] %s968_s15 }
  0x72   : > { %s970_s16 = scalar_lea.vmem %s969_s15, 256  ;;  %p971_p0 = scmp.lt.s32.totalorder %s1316_s17, %s969_s15 }
  0x73   : > { %p966_p7 = pnand %p964_p5, %p950_p12  ;;  %p972_p4 = scmp.lt.s32.totalorder %s970_s16, %s963_s18 }
  0x75   : > { %p967_p9 = pneg %p966_p7  ;;  %p973_p2 = por %p972_p4, %p971_p0 }
  0x77   : > { %p974_p8 = pnand %p973_p2, %p967_p9 }
  0x79   : > { %977 = shalt.err (!%p974_p8)
}
  0x7a   : > { %788 = dma.hbm_to_vmem [thread:$0]  (!%p1320_p11), %s1314_s27, 128, %s1316_s17, %s240_s6  }
  0x7b   : > { %p1490_p1 = scmp.ne.s32.totalorder %s1484_s30, 0 }
  0x7c   : > { %s1352_s10 = sand.u32 (!%p1490_p1), 1, %s1084_s19   ;;  %p1491_p12 = scmp.ne.s32.totalorder (!%p1490_p1), %s1481_s28, 0 }
  0x7d   : > { %260 = sbr.rel (%p1490_p1) target bundleno = 594 (0x252), region = 36  ;;  %s703_s9 = sshll.u32 (!%p1490_p1), %s1352_s10, 3 }
  0x7e   : > { %s263_s24 = scalar_lea.sflag (!%p1490_p1), [#allocation3], %s1352_s10  ;;  %s266_s29 = scalar_lea.vmem (!%p1490_p1), [#allocation2], %s703_s9 }
  0x84   : > { %1059 = dma.done.wait (%p1491_p12), %s263_s24, 128  }
  0x85   : > { %1061 = vsyncadd (%p1491_p12), %s263_s24, 4294967168  ;;  %p1492_p13 = scmp.ne.s32.totalorder %s1479_s26, 0 }
  0x87   : > { %1063 = dma.done.wait (%p1492_p13), [#allocation6], 576  }
  0x88   : > { %1065 = vsyncadd (%p1492_p13), [#allocation6], 4294966720 }
  0x89   : > { %1067 = dma.done.wait (%p1492_p13), [#allocation9], 64  }
  0x8a   : > { %1069 = vsyncadd (%p1492_p13), [#allocation9], 4294967232  ;;  %vm315_vm0 = vcmask 64512   ;;  %v310_v0 = vld [vmem:[%s266_s29] sm:$0xff]  ;;  %v311_v1 = vld [vmem:[#allocation5] sm:$0xff]  ;;  %v1108_v5 = vmov 0.0|0.0  }
  0x8b   : > { %v312_v2 = vld [vmem:[#allocation5 + $0x8] sm:$0xff]  ;;  %732 = vmatprep.subr.mxu0 %v310_v0  ;;  %734 = vmatprep.mubr.msk.f32.mxu0 %vm315_vm0, %v311_v1  ;;  %v313_v3 = vld [vmem:[#allocation5 + $0x10] sm:$0xff]  ;;  %v314_v4 = vld [vmem:[#allocation5 + $0x18] sm:$0xff]  ;;  %vm1109_vm1 = vmmov 0   ;;  %v1110_v6 = vmov 0.0   ;;  %v1111_v8 = vmov 0  }
  0x8c   : > { %733 = vmatpush3.msra.mxu0 %v310_v0  ;;  %751 = vmatprep.subr.bf16.mxu1 %v1108_v5  ;;  %v431_v7 = vld [vmem:[#allocation8] sm:$0xf]  ;;  %s707_s26 = sshll.u32 %s1352_s10, 5  ;;  %vm413_vm2 = vcmask 130048   ;;  %v430_v23 = vld [vmem:[#allocation7] sm:$0xf] }
  0x8d   : > { %735 = vmatmul.mubr.msk.f32.vlgmr.msra.gmra.mrb[0].mxu0 %vm315_vm0, %v312_v2  ;;  %748 = vmatprep.mubr.msk.f32.mxu1 %vm1109_vm1, %v1110_v6  ;;  %s1369_s28 = scalar_lea.vmem [#allocation10], %s707_s26  ;;  %vm437_vm7 = vcmask 261120   ;;  %s721_s27 = sshll.u32 %s1092_s21, 9 }
  0x8e   : > { %737 = vmatprep.mubr.msk.f32.mxu0 %vm315_vm0, %v313_v3  ;;  %863 = vset.pattern.permute.xlu0 %v1111_v8  ;;  %s533_s30 = sshll.u32 %s1369_s28, 4  ;;  %s1386_s6 = scalar_lea.hbm %s1470_s4, %s721_s27  ;;  %s1380_s30 = int_to_ptr.vmem [resolvable:$true] %s533_s30 }
  0x8f   : > { %434 = vperm.xlu0 %863, %v431_v7   ;;  %s514_s12 = scalar_lea.sflag [#allocation4], %s1352_s10  ;;  %s978_s11 = scalar_lea.vmem %s1380_s30, 512 }
  0x90   : > { %p979_p11 = scmp.ne.s32.totalorder %s1380_s30, %s978_s11  ;;  %s1112_s18 = smov [#allocation10]  }
  0x91   : > { %738 = vmatmul.mubr.msk.f32.gmra.mrb[2].mxu0 %vm315_vm0, %v314_v4  ;;  %s982_s14 = sshll.u32 %s1112_s18, 4  ;;  %s983_s14 = int_to_ptr.vmem [resolvable:$false] %s982_s14 }
  0x92   : > { %p980_p6 = pnand %p979_p11, %p1297_p10  ;;  %s984_s15 = scalar_lea.vmem %s983_s14, 1024 }
  0x93   : > { %p985_p5 = scmp.lt.s32.totalorder %s1380_s30, %s983_s14  ;;  %p986_p7 = scmp.lt.s32.totalorder %s984_s15, %s978_s11 }
  0x94   : > { %p981_p3 = pneg %p980_p6 }
  0x95   : > { %p987_p9 = por %p986_p7, %p985_p5 }
  0x97   : > { %p988_p0 = pnand %p987_p9, %p981_p3 }
 0x160   : > { %v736_v9 = vpop.f32.mrb[0].mxu0 }
 0x161   : > { %415 = vst.msk [vmem:[%s1369_s28 + $0x8] sm:$0xff] %vm413_vm2, %v736_v9  ;;  %v423_v10 = vmul.f32 0.2, %v736_v9  ;;  %v394_v11 = vpop.f32.mrb[1].mxu0  ;;  %vm419_vm3 = vcmp.gt.f32.partialorder %v736_v9, 0.0 }
 0x162   : > { %414 = vst.msk [vmem:[%s1369_s28] sm:$0xff] %vm413_vm2, %v394_v11  ;;  %v422_v12 = vmul.f32 0.2, %v394_v11  ;;  %vm418_vm4 = vcmp.gt.f32.partialorder %v394_v11, 0.0 }
 0x163   : > { %v427_v13 = vsel %vm419_vm3, %v736_v9, %v423_v10 }
 0x164   : > { %v739_v14 = vpop.f32.mrb[2].mxu0  ;;  %v426_v15 = vsel %vm418_vm4, %v394_v11, %v422_v12 }
 0x165   : > { %417 = vst.msk [vmem:[%s1369_s28 + $0x18] sm:$0xff] %vm413_vm2, %v739_v14  ;;  %vm421_vm5 = vcmp.gt.f32.partialorder %v739_v14, 0.0  ;;  %v425_v16 = vmul.f32 0.2, %v739_v14  ;;  %v404_v17 = vpop.f32.mrb[3].mxu0  ;;  %v752_v18 = vpack.c.bf16 %v427_v13, %v426_v15 }
 0x166   : > { %416 = vst.msk [vmem:[%s1369_s28 + $0x10] sm:$0xff] %vm413_vm2, %v404_v17  ;;  %vm420_vm6 = vcmp.gt.f32.partialorder %v404_v17, 0.0  ;;  %v424_v19 = vmul.f32 0.2, %v404_v17 }
 0x167   : > { %753 = vmatpush3.bf16.msra.mxu1 %v752_v18  ;;  %v429_v20 = vsel %vm421_vm5, %v739_v14, %v425_v16 }
 0x168   : > { %v428_v21 = vsel %vm420_vm6, %v404_v17, %v424_v19  ;;  %754 = vmatprep.subr.bf16.mxu1 %v1108_v5 }
 0x169   : > { %v755_v22 = vpack.c.bf16 %v429_v20, %v428_v21 }
 0x16b   : > { %756 = vmatpush3.bf16.msra.mxu1 %v755_v22 }
 0x16e   : > { %749 = vmatmul.mubr.msk.f32.vlgmr.msra.gmra.mrb[0].mxu1 %vm437_vm7, %v430_v23 }
 0x16f   : > { %991 = shalt.err (!%p988_p0)
}
 0x170   : > { %s992_s16 = scalar_lea.hbm %s1386_s6, 512  ;;  %s996_s29 = scalar_lea.hbm %s1470_s4, 1024 }
 0x171   : > { %p993_p4 = scmp.ne.s32.totalorder %s1386_s6, %s992_s16  ;;  %p997_p1 = scmp.lt.u32.totalorder %s1386_s6, %s1470_s4 }
 0x172   : > { %p998_p12 = scmp.lt.u32.totalorder %s996_s29, %s992_s16  ;;  %p1000_p11 = scmp.lt.u32.totalorder %s992_s16, %s1386_s6 }
 0x173   : > { %p994_p2 = pnand %p993_p4, %p1297_p10 }
 0x174   : > { %p999_p13 = por %p998_p12, %p997_p1 }
 0x175   : > { %p995_p8 = pneg %p994_p2 }
 0x176   : > { %p1001_p6 = por %p1000_p11, %p999_p13 }
 0x178   : > { %p1002_p3 = pnand %p1001_p6, %p995_p8 }
 0x17a   : > { %1005 = shalt.err (!%p1002_p3)
}
 0x17b   : > { %s1113_s27 = smov 128   ;;  %s1114_s17 = smov 8   ;;  %v435_v24 = vpop.permute.xlu0 %434  ;;  %vm511_vm8 = vcmask 125952  }
 0x17c   : > { %771 = dma.vmem_to_hbm [thread:$0]  (%p1297_p10), %s1380_s30, 512, %s1386_s6, %s514_s12, %s1113_s27, %s1113_s27, %s1114_s17  }
 0x17d   : > { %s708_s25 = sshll.u32 %s1352_s10, 2  ;;  %s718_s11 = sshll.u32 %s1092_s21, 6 }
 0x17e   : > { %s309_s18 = scalar_lea.vmem [#allocation11], %s708_s25  ;;  %s1417_s9 = scalar_lea.hbm %s1471_s5, %s718_s11 }
 0x17f   : > { %s550_s14 = sshll.u32 %s309_s18, 4  ;;  %s519_s30 = scalar_lea.sflag [#allocation12], %s1352_s10  ;;  %s1419_s14 = int_to_ptr.vmem [resolvable:$true] %s550_s14 }
 0x180   : > { %s1006_s6 = scalar_lea.vmem %s1419_s14, 64  ;;  %s1115_s21 = smov [#allocation11]  }
 0x181   : > { %p1007_p5 = scmp.ne.s32.totalorder %s1419_s14, %s1006_s6  ;;  %s1010_s12 = sshll.u32 %s1115_s21, 4  ;;  %s1011_s12 = int_to_ptr.vmem [resolvable:$false] %s1010_s12 }
 0x182   : > { %s1012_s24 = scalar_lea.vmem %s1011_s12, 128  ;;  %p1013_p0 = scmp.lt.s32.totalorder %s1419_s14, %s1011_s12 }
 0x183   : > { %p1008_p7 = pnand %p1007_p5, %p1297_p10  ;;  %p1014_p4 = scmp.lt.s32.totalorder %s1012_s24, %s1006_s6 }
 0x185   : > { %p1009_p9 = pneg %p1008_p7  ;;  %p1015_p2 = por %p1014_p4, %p1013_p0 }
 0x187   : > { %p1016_p8 = pnand %p1015_p2, %p1009_p9 }
 0x241   : > { %v507_v25 = vpop.f32.mrb[0].mxu1 }
 0x242   : > { %v508_v26 = vadd.f32 %v507_v25, %v435_v24  ;;  %v750_v27 = vpop.f32.mrb[1].mxu1 }
 0x244   : > { %512 = vst.msk [vmem:[%s309_s18] sm:$0xf] %vm511_vm8, %v508_v26 }
 0x245   : > { %1019 = shalt.err (!%p1016_p8)
}
 0x246   : > { %s1020_s10 = scalar_lea.hbm %s1417_s9, 64  ;;  %s1024_s28 = scalar_lea.hbm %s1471_s5, 128 }
 0x247   : > { %p1021_p1 = scmp.ne.s32.totalorder %s1417_s9, %s1020_s10  ;;  %p1025_p11 = scmp.lt.u32.totalorder %s1417_s9, %s1471_s5 }
 0x248   : > { %p1026_p6 = scmp.lt.u32.totalorder %s1024_s28, %s1020_s10  ;;  %p1028_p5 = scmp.lt.u32.totalorder %s1020_s10, %s1417_s9 }
 0x249   : > { %p1022_p12 = pnand %p1021_p1, %p1297_p10 }
 0x24a   : > { %p1027_p3 = por %p1026_p6, %p1025_p11 }
 0x24b   : > { %p1023_p13 = pneg %p1022_p12 }
 0x24c   : > { %p1029_p7 = por %p1028_p5, %p1027_p3 }
 0x24e   : > { %p1030_p9 = pnand %p1029_p7, %p1023_p13 }
 0x250   : > { %1033 = shalt.err (!%p1030_p9)
}
 0x251   : > { %772 = dma.vmem_to_hbm [thread:$0]  (%p1297_p10), %s1419_s14, 64, %s1417_s9, %s519_s30  }
 0x252 PF: > { %s1493_s25 = sld [smem:[#allocation18_spill]]  ;;  %s1494_s11 = sld [smem:[#allocation19_spill]] }
 0x253   : > { %p1496_p4 = scmp.ge.s32.totalorder %s1100_s23, 2 }
 0x258   : > { %s562_s18 = sand.u32 1, %s1493_s25   ;;  %p1495_p0 = scmp.ne.s32.totalorder %s1494_s11, 0 }
 0x259   : > { %s563_s15 = scalar_lea.sflag [#allocation4], %s562_s18 }
 0x25a   : > { %p790_p2 = pnand %p1496_p4, %p1495_p0 }
 0x25c   : > { %1071 = dma.done.wait (!%p790_p2), %s563_s15, 512  }
 0x25d   : > { %1073 = vsyncadd (!%p790_p2), %s563_s15, 4294966784  ;;  %s572_s16 = scalar_lea.sflag [#allocation12], %s562_s18 }
 0x25e   : > { %1075 = dma.done.wait (!%p790_p2), %s572_s16, 64  }
 0x25f   : > { %1077 = vsyncadd (!%p790_p2), %s572_s16, 4294967232  ;;  %s27_s23 = sadd.s32 1, %s1100_s23   ;;  %s1497_s18 = smov %s1084_s19 }
 0x260   : > { %p24_p8 = scmp.ge.s32.totalorder %s27_s23, 4   ;;  %s1498_s19 = smov %s1088_s20 }
 0x261   : > { %s1499_s20 = smov %s1309_s13  ;;  %s1500_s21 = smov %s1096_s22 }
 0x262   : > { %s1501_s22 = smov %s1503_s7  ;;  %26 = sbr.rel (!%p24_p8) target bundleno = 10 (0xa), region = 110 }
 0x269   :  { %577 = vsyncpa [#allocation3], 1 }
 0x26a   :  { %579 = vsyncpa [#allocation3 + $0x1], 1 }
 0x26b   :  { %580 = vsyncpa [#allocation6], 1 }
 0x26c   :  { %581 = vsyncpa [#allocation9], 1 }
 0x26d   :  { %582 = vsyncpa [#allocation4], 1 }
 0x26e   :  { %584 = vsyncpa [#allocation4 + $0x1], 1 }
 0x26f   :  { %585 = vsyncpa [#allocation12], 1 }
 0x270   :  { %587 = vsyncpa [#allocation12 + $0x1], 1 }

</bundles_post_ra>
